<compile_context>
chip_gen: v7x
topology: tpu7x:2x2x1
jax: 0.10.0
libtpu: 0.0.40
codegen_flags: <defaults>
</compile_context>

<pallas_src>
import functools

import jax
import jax.numpy as jnp
import numpy as np
from jax import lax
from jax.experimental import pallas as pl
from jax.experimental.pallas import tpu as pltpu


def _round_up(x, m):
    return (x + m - 1) // m * m


def _basic_block_kernel(xm_ref, xh_ref, w1_ref, b1_ref, w2_ref, b2_ref, out_ref,
                        *, img_w):
    """One (batch, pixel-tile) grid step.

    xm_ref : (1, Cin, TM)    bf16  main tile of pitch-W flattened x
    xh_ref : (1, Cin, HALO)  bf16  next HALO columns of x (3x3 halo)
    w1_ref : (9, P, Cin)     bf16  conv1 taps (t = dh*3+dw), bn1 scale folded in
    b1_ref : (P, 1)          f32   bn1 bias
    w2_ref : (P, P)          bf16  conv2 (1x1) weights, bn2 scale folded in
    b2_ref : (P, 1)          f32   bn2 bias
    out_ref: (1, P, TM)            out dtype (f32 or bf16)
    """
    tm = out_ref.shape[-1]
    # Stitch tile + halo once; every tap is then a static lane-shifted view.
    xt = jnp.concatenate([xm_ref[0], xh_ref[0]], axis=-1)        # (Cin, TM+HALO)

    # conv1 (3x3 valid) + bn1 scale: 9 accumulating GEMMs, f32 accumulation.
    acc = jnp.dot(w1_ref[0], xt[:, :tm], preferred_element_type=jnp.float32)
    for t in range(1, 9):
        off = (t // 3) * img_w + (t % 3)
        acc = acc + jnp.dot(w1_ref[t], xt[:, off:off + tm],
                            preferred_element_type=jnp.float32)
    h1 = jnp.maximum(acc + b1_ref[...], 0.0)                     # bn1 bias + relu

    # conv2 (1x1) + bn2.
    h2 = jnp.dot(w2_ref[...], h1.astype(jnp.bfloat16),
                 preferred_element_type=jnp.float32) + b2_ref[...]

    # Residual: x[:, :, :Ho, :Wo] in pitch-W space == tap (0,0) == the main tile.
    res = xm_ref[0].astype(jnp.float32)
    out_ref[0] = jnp.maximum(h2 + res, 0.0).astype(out_ref.dtype)


def basic_block_nchw(x_nchw, w1, w2, bn1, bn2, *, eps=1e-5, tile_m=1024,
                     out_dtype=jnp.float32, main_buffers=2,
                     vmem_budget_bytes=44 * 2**20):
    """x_nchw: (N, Cin, H, W) f32/bf16.  w1: (3,3,Cin,P) HWIO.  w2: (P_in,P_out) IO.
    bn* = (gamma, beta, running_mean, running_var).  Returns NCHW (N, P, H-2, W-2).
    out_dtype=jnp.bfloat16 halves the output write stream (for a fused next block).
    main_buffers=3 enables deeper pipelining of the dominant stream (v6e)."""
    N, Cin, H, W = x_nchw.shape
    P = w1.shape[-1]
    assert w1.shape == (3, 3, Cin, P), w1.shape
    assert w2.shape == (P, P), w2.shape
    assert Cin == P, "downsample=None requires inplanes == planes for the residual"
    assert H >= 3 and W >= 3
    Ho, Wo = H - 2, W - 2

    # Pitch-W flattened pixel space: output pixel (oh, ow) lives at oh*W + ow and
    # conv1 tap (dh, dw) reads offset dh*W + dw of the SAME space.
    HALO = _round_up(2 * W + 2, 128)       # max tap offset, padded to full lanes
    Mout = _round_up(Ho * W, 128)          # flattened output extent (128 lanes)

    # Pixel tile: multiple of HALO (so the halo stream is a clean block), capped by
    # a conservative VMEM budget (v7x: 64 MiB physical; v5e/v6e: 128 MiB).
    TM = max(HALO, (tile_m // HALO) * HALO)
    TM = min(TM, _round_up(Mout, HALO))

    def vmem_bytes(tm):
        out_b = np.dtype(out_dtype).itemsize
        nbuf = max(2, main_buffers)
        stream = nbuf * Cin * tm * 2 + 2 * Cin * HALO * 2 + 2 * P * tm * out_b
        weights = 2 * (9 * P * Cin * 2 + P * P * 2 + 2 * P * 4)
        scratch = Cin * (tm + 2 * HALO) * 2 + 3 * P * tm * 4 + Cin * tm * 4
        return stream + weights + scratch

    while TM > HALO and vmem_bytes(TM) > vmem_budget_bytes:
        TM -= HALO
    T = pl.cdiv(Mout, TM)
    Mx = T * TM + HALO                     # padded x extent (covers last halo)

    def fold(bn):
        gamma, beta, mean, var = [jnp.asarray(a, jnp.float32) for a in bn]
        scale = gamma / jnp.sqrt(var + eps)
        return scale, beta - mean * scale

    s1, b1 = fold(bn1)
    s2, b2 = fold(bn2)

    # Fold BN scales into bf16 conv weights (eval-mode BN).  w1t[t=dh*3+dw, p, c].
    w1t = (jnp.transpose(w1, (0, 1, 3, 2)).reshape(9, P, Cin)
           * s1[None, :, None]).astype(jnp.bfloat16)
    w2t = (jnp.transpose(w2, (1, 0)) * s2[:, None]).astype(jnp.bfloat16)
    b1c = b1.reshape(P, 1)
    b2c = b2.reshape(P, 1)

    # Single bf16 copy of x (flatten + zero-pad).  No im2col, no residual copy.
    x_flat = x_nchw.astype(jnp.bfloat16).reshape(N, Cin, H * W)
    x_flat = jnp.pad(x_flat, ((0, 0), (0, 0), (0, Mx - H * W)))

    halo_stride = TM // HALO
    if main_buffers != 2:
        main_spec = pl.BlockSpec((1, Cin, TM), lambda n, m: (n, 0, m),
                                 pipeline_mode=pl.Buffered(main_buffers))
    else:
        main_spec = pl.BlockSpec((1, Cin, TM), lambda n, m: (n, 0, m))

    vmem_limit = int(min(56 * 2**20, max(32 * 2**20, 2 * vmem_bytes(TM))))

    kernel = functools.partial(_basic_block_kernel, img_w=W)
    out_flat = pl.pallas_call(
        kernel,
        out_shape=jax.ShapeDtypeStruct((N, P, Mout), out_dtype),
        grid_spec=pltpu.PrefetchScalarGridSpec(
            num_scalar_prefetch=0,
            grid=(N, T),
            in_specs=[
                main_spec,                                               # x tile
                pl.BlockSpec((1, Cin, HALO),
                             lambda n, m: (n, 0, (m + 1) * halo_stride)),  # halo
                pl.BlockSpec((9, P, Cin), lambda n, m: (0, 0, 0)),
                pl.BlockSpec((P, 1), lambda n, m: (0, 0)),
                pl.BlockSpec((P, P), lambda n, m: (0, 0)),
                pl.BlockSpec((P, 1), lambda n, m: (0, 0)),
            ],
            out_specs=pl.BlockSpec((1, P, TM), lambda n, m: (n, 0, m)),
        ),
        compiler_params=pltpu.CompilerParams(
            dimension_semantics=("parallel", "parallel"),
            vmem_limit_bytes=vmem_limit),
    )(x_flat, x_flat, w1t, b1c, w2t, b2c)

    # Drop the 2 junk columns per row (pitch W -> Wo) and the padded tail.
    return out_flat[:, :, :Ho * W].reshape(N, P, Ho, W)[:, :, :, :Wo]


def _reference_nchw(x, w1, w2, bn1, bn2):
    """Plain-JAX f32 reference mirroring the PyTorch forward (eval-mode BN)."""
    eps = 1e-5
    w1_oihw = jnp.transpose(w1, (3, 2, 0, 1))
    out = lax.conv_general_dilated(x, w1_oihw, (1, 1), "VALID",
                                   dimension_numbers=("NCHW", "OIHW", "NCHW"))
    g, b, m, v = bn1
    out = (out - m[None, :, None, None]) / jnp.sqrt(v + eps)[None, :, None, None]
    out = out * g[None, :, None, None] + b[None, :, None, None]
    out = jnp.maximum(out, 0.0)
    w2_oihw = jnp.transpose(w2, (1, 0))[:, :, None, None]
    out = lax.conv_general_dilated(out, w2_oihw, (1, 1), "VALID",
                                   dimension_numbers=("NCHW", "OIHW", "NCHW"))
    g, b, m, v = bn2
    out = (out - m[None, :, None, None]) / jnp.sqrt(v + eps)[None, :, None, None]
    out = out * g[None, :, None, None] + b[None, :, None, None]
    residual = x[:, :, :-2, :-2]
    return jnp.maximum(out + residual, 0.0)


if __name__ == "__main__":
    key = jax.random.PRNGKey(0)
    # Small but sublane-friendly (channels multiple of 8); 18x18 -> 16x16 output.
    # (Correctness shapes only -- do not profile/tune at these sizes.)
    N, C, H, W = 2, 8, 18, 18
    P = C

    ks = jax.random.split(key, 8)
    x = jax.random.normal(ks[0], (N, C, H, W), jnp.float32)
    w1 = jax.random.normal(ks[1], (3, 3, C, P), jnp.float32) * 0.1   # conv1 (HWIO)
    w2 = jax.random.normal(ks[2], (P, P), jnp.float32) * 0.1         # conv2 1x1 (IO)
    bn1 = (jax.random.uniform(ks[3], (P,), jnp.float32, 0.5, 1.5),   # gamma
           jax.random.normal(ks[4], (P,), jnp.float32) * 0.1,        # beta
           jax.random.normal(ks[5], (P,), jnp.float32) * 0.1,        # running_mean
           jax.random.uniform(ks[6], (P,), jnp.float32, 0.5, 1.5))   # running_var
    bn2 = (jnp.ones((P,), jnp.float32),
           jnp.zeros((P,), jnp.float32),
           jax.random.normal(ks[7], (P,), jnp.float32) * 0.1,
           jnp.ones((P,), jnp.float32))

    ref = _reference_nchw(x, w1, w2, bn1, bn2)

    # Exercise: multi-tile grid (128), a boundary-clipped last tile (256 vs Mout=384),
    # and the single-tile default path (1024 -> clamped to 384).
    for tm in (128, 256, 1024):
        out = jax.block_until_ready(basic_block_nchw(x, w1, w2, bn1, bn2, tile_m=tm))
        assert out.shape == (N, P, H - 2, W - 2), out.shape
        max_err = float(jnp.max(jnp.abs(out - ref)))
        # bf16 MXU operands / bf16 residual vs pure-f32 reference -> loose tolerance.
        assert jnp.allclose(out, ref, rtol=5e-2, atol=5e-2), (tm, max_err)

    # bf16-output variant (halves the output write stream for a fused next block).
    out16 = jax.block_until_ready(
        basic_block_nchw(x, w1, w2, bn1, bn2, tile_m=256, out_dtype=jnp.bfloat16))
    assert jnp.allclose(out16.astype(jnp.float32), ref, rtol=1e-1, atol=1e-1)

    print("KERNEL_OK")
</pallas_src>

<mosaic_0001>
module attributes {stable_mosaic.version = 11 : i64} {
  func.func @_basic_block_kernel(%arg0: i32, %arg1: i32, %arg2: memref<1x8x128xbf16, #tpu.memory_space<vmem>>, %arg3: memref<1x8x128xbf16, #tpu.memory_space<vmem>>, %arg4: memref<9x8x8xbf16, #tpu.memory_space<vmem>>, %arg5: memref<8x1xf32, #tpu.memory_space<vmem>>, %arg6: memref<8x8xbf16, #tpu.memory_space<vmem>>, %arg7: memref<8x1xf32, #tpu.memory_space<vmem>>, %arg8: memref<1x8x128xf32, #tpu.memory_space<vmem>>) attributes {dimension_semantics = [#tpu.dimension_semantics<parallel>, #tpu.dimension_semantics<parallel>], iteration_bounds = array<i64: 2, 3>, scalar_prefetch = 0 : i64, scratch_operands = 0 : i64, tpu.core_type = #tpu.core_type<tc>, window_params = [{transform_indices = @transform_0, window_bounds = array<i64: 1, 8, 128>}, {transform_indices = @transform_1, window_bounds = array<i64: 1, 8, 128>}, {pipeline_mode = #tpu.pipeline_mode<synchronous>, transform_indices = @transform_2, window_bounds = array<i64: 9, 8, 8>}, {pipeline_mode = #tpu.pipeline_mode<synchronous>, transform_indices = @transform_3, window_bounds = array<i64: 8, 1>}, {pipeline_mode = #tpu.pipeline_mode<synchronous>, transform_indices = @transform_4, window_bounds = array<i64: 8, 8>}, {pipeline_mode = #tpu.pipeline_mode<synchronous>, transform_indices = @transform_5, window_bounds = array<i64: 8, 1>}, {transform_indices = @transform_6, window_bounds = array<i64: 1, 8, 128>}]} {
    %c0 = arith.constant 0 : index
    %c0_0 = arith.constant 0 : index
    %c0_1 = arith.constant 0 : index
    %0 = vector.load %arg2[%c0, %c0_0, %c0_1] : memref<1x8x128xbf16, #tpu.memory_space<vmem>>, vector<1x8x128xbf16>
    %1 = vector.shape_cast %0 : vector<1x8x128xbf16> to vector<8x128xbf16>
    %c0_2 = arith.constant 0 : index
    %c0_3 = arith.constant 0 : index
    %c0_4 = arith.constant 0 : index
    %2 = vector.load %arg3[%c0_2, %c0_3, %c0_4] : memref<1x8x128xbf16, #tpu.memory_space<vmem>>, vector<1x8x128xbf16>
    %3 = vector.shape_cast %2 : vector<1x8x128xbf16> to vector<8x128xbf16>
    %4 = tpu.concatenate %1, %3 in 1 : vector<8x128xbf16>, vector<8x128xbf16> -> vector<8x256xbf16>
    %c0_5 = arith.constant 0 : index
    %c0_6 = arith.constant 0 : index
    %c0_7 = arith.constant 0 : index
    %5 = vector.load %arg4[%c0_5, %c0_6, %c0_7] : memref<9x8x8xbf16, #tpu.memory_space<vmem>>, vector<1x8x8xbf16>
    %6 = vector.shape_cast %5 : vector<1x8x8xbf16> to vector<8x8xbf16>
    %7 = vector.extract_strided_slice %4 {offsets = [0, 0], sizes = [8, 128], strides = [1, 1]} : vector<8x256xbf16> to vector<8x128xbf16>
    %cst = arith.constant dense<0.000000e+00> : vector<8x128xf32>
    %8 = tpu.matmul %6, %7, %cst {dimension_numbers = #tpu.dot_dimension_numbers<[1], [0], [0], [1], [0, 0, 1, 1], [], []>} : vector<8x8xbf16>, vector<8x128xbf16>, vector<8x128xf32> -> vector<8x128xf32>
    %c1 = arith.constant 1 : index
    %c0_8 = arith.constant 0 : index
    %c0_9 = arith.constant 0 : index
    %9 = vector.load %arg4[%c1, %c0_8, %c0_9] : memref<9x8x8xbf16, #tpu.memory_space<vmem>>, vector<1x8x8xbf16>
    %10 = vector.shape_cast %9 : vector<1x8x8xbf16> to vector<8x8xbf16>
    %11 = vector.extract_strided_slice %4 {offsets = [0, 1], sizes = [8, 128], strides = [1, 1]} : vector<8x256xbf16> to vector<8x128xbf16>
    %cst_10 = arith.constant dense<0.000000e+00> : vector<8x128xf32>
    %12 = tpu.matmul %10, %11, %cst_10 {dimension_numbers = #tpu.dot_dimension_numbers<[1], [0], [0], [1], [0, 0, 1, 1], [], []>} : vector<8x8xbf16>, vector<8x128xbf16>, vector<8x128xf32> -> vector<8x128xf32>
    %13 = arith.addf %8, %12 : vector<8x128xf32>
    %c2 = arith.constant 2 : index
    %c0_11 = arith.constant 0 : index
    %c0_12 = arith.constant 0 : index
    %14 = vector.load %arg4[%c2, %c0_11, %c0_12] : memref<9x8x8xbf16, #tpu.memory_space<vmem>>, vector<1x8x8xbf16>
    %15 = vector.shape_cast %14 : vector<1x8x8xbf16> to vector<8x8xbf16>
    %16 = vector.extract_strided_slice %4 {offsets = [0, 2], sizes = [8, 128], strides = [1, 1]} : vector<8x256xbf16> to vector<8x128xbf16>
    %cst_13 = arith.constant dense<0.000000e+00> : vector<8x128xf32>
    %17 = tpu.matmul %15, %16, %cst_13 {dimension_numbers = #tpu.dot_dimension_numbers<[1], [0], [0], [1], [0, 0, 1, 1], [], []>} : vector<8x8xbf16>, vector<8x128xbf16>, vector<8x128xf32> -> vector<8x128xf32>
    %18 = arith.addf %13, %17 : vector<8x128xf32>
    %c3 = arith.constant 3 : index
    %c0_14 = arith.constant 0 : index
    %c0_15 = arith.constant 0 : index
    %19 = vector.load %arg4[%c3, %c0_14, %c0_15] : memref<9x8x8xbf16, #tpu.memory_space<vmem>>, vector<1x8x8xbf16>
    %20 = vector.shape_cast %19 : vector<1x8x8xbf16> to vector<8x8xbf16>
    %21 = vector.extract_strided_slice %4 {offsets = [0, 18], sizes = [8, 128], strides = [1, 1]} : vector<8x256xbf16> to vector<8x128xbf16>
    %cst_16 = arith.constant dense<0.000000e+00> : vector<8x128xf32>
    %22 = tpu.matmul %20, %21, %cst_16 {dimension_numbers = #tpu.dot_dimension_numbers<[1], [0], [0], [1], [0, 0, 1, 1], [], []>} : vector<8x8xbf16>, vector<8x128xbf16>, vector<8x128xf32> -> vector<8x128xf32>
    %23 = arith.addf %18, %22 : vector<8x128xf32>
    %c4 = arith.constant 4 : index
    %c0_17 = arith.constant 0 : index
    %c0_18 = arith.constant 0 : index
    %24 = vector.load %arg4[%c4, %c0_17, %c0_18] : memref<9x8x8xbf16, #tpu.memory_space<vmem>>, vector<1x8x8xbf16>
    %25 = vector.shape_cast %24 : vector<1x8x8xbf16> to vector<8x8xbf16>
    %26 = vector.extract_strided_slice %4 {offsets = [0, 19], sizes = [8, 128], strides = [1, 1]} : vector<8x256xbf16> to vector<8x128xbf16>
    %cst_19 = arith.constant dense<0.000000e+00> : vector<8x128xf32>
    %27 = tpu.matmul %25, %26, %cst_19 {dimension_numbers = #tpu.dot_dimension_numbers<[1], [0], [0], [1], [0, 0, 1, 1], [], []>} : vector<8x8xbf16>, vector<8x128xbf16>, vector<8x128xf32> -> vector<8x128xf32>
    %28 = arith.addf %23, %27 : vector<8x128xf32>
    %c5 = arith.constant 5 : index
    %c0_20 = arith.constant 0 : index
    %c0_21 = arith.constant 0 : index
    %29 = vector.load %arg4[%c5, %c0_20, %c0_21] : memref<9x8x8xbf16, #tpu.memory_space<vmem>>, vector<1x8x8xbf16>
    %30 = vector.shape_cast %29 : vector<1x8x8xbf16> to vector<8x8xbf16>
    %31 = vector.extract_strided_slice %4 {offsets = [0, 20], sizes = [8, 128], strides = [1, 1]} : vector<8x256xbf16> to vector<8x128xbf16>
    %cst_22 = arith.constant dense<0.000000e+00> : vector<8x128xf32>
    %32 = tpu.matmul %30, %31, %cst_22 {dimension_numbers = #tpu.dot_dimension_numbers<[1], [0], [0], [1], [0, 0, 1, 1], [], []>} : vector<8x8xbf16>, vector<8x128xbf16>, vector<8x128xf32> -> vector<8x128xf32>
    %33 = arith.addf %28, %32 : vector<8x128xf32>
    %c6 = arith.constant 6 : index
    %c0_23 = arith.constant 0 : index
    %c0_24 = arith.constant 0 : index
    %34 = vector.load %arg4[%c6, %c0_23, %c0_24] : memref<9x8x8xbf16, #tpu.memory_space<vmem>>, vector<1x8x8xbf16>
    %35 = vector.shape_cast %34 : vector<1x8x8xbf16> to vector<8x8xbf16>
    %36 = vector.extract_strided_slice %4 {offsets = [0, 36], sizes = [8, 128], strides = [1, 1]} : vector<8x256xbf16> to vector<8x128xbf16>
    %cst_25 = arith.constant dense<0.000000e+00> : vector<8x128xf32>
    %37 = tpu.matmul %35, %36, %cst_25 {dimension_numbers = #tpu.dot_dimension_numbers<[1], [0], [0], [1], [0, 0, 1, 1], [], []>} : vector<8x8xbf16>, vector<8x128xbf16>, vector<8x128xf32> -> vector<8x128xf32>
    %38 = arith.addf %33, %37 : vector<8x128xf32>
    %c7 = arith.constant 7 : index
    %c0_26 = arith.constant 0 : index
    %c0_27 = arith.constant 0 : index
    %39 = vector.load %arg4[%c7, %c0_26, %c0_27] : memref<9x8x8xbf16, #tpu.memory_space<vmem>>, vector<1x8x8xbf16>
    %40 = vector.shape_cast %39 : vector<1x8x8xbf16> to vector<8x8xbf16>
    %41 = vector.extract_strided_slice %4 {offsets = [0, 37], sizes = [8, 128], strides = [1, 1]} : vector<8x256xbf16> to vector<8x128xbf16>
    %cst_28 = arith.constant dense<0.000000e+00> : vector<8x128xf32>
    %42 = tpu.matmul %40, %41, %cst_28 {dimension_numbers = #tpu.dot_dimension_numbers<[1], [0], [0], [1], [0, 0, 1, 1], [], []>} : vector<8x8xbf16>, vector<8x128xbf16>, vector<8x128xf32> -> vector<8x128xf32>
    %43 = arith.addf %38, %42 : vector<8x128xf32>
    %c8 = arith.constant 8 : index
    %c0_29 = arith.constant 0 : index
    %c0_30 = arith.constant 0 : index
    %44 = vector.load %arg4[%c8, %c0_29, %c0_30] : memref<9x8x8xbf16, #tpu.memory_space<vmem>>, vector<1x8x8xbf16>
    %45 = vector.shape_cast %44 : vector<1x8x8xbf16> to vector<8x8xbf16>
    %46 = vector.extract_strided_slice %4 {offsets = [0, 38], sizes = [8, 128], strides = [1, 1]} : vector<8x256xbf16> to vector<8x128xbf16>
    %cst_31 = arith.constant dense<0.000000e+00> : vector<8x128xf32>
    %47 = tpu.matmul %45, %46, %cst_31 {dimension_numbers = #tpu.dot_dimension_numbers<[1], [0], [0], [1], [0, 0, 1, 1], [], []>} : vector<8x8xbf16>, vector<8x128xbf16>, vector<8x128xf32> -> vector<8x128xf32>
    %48 = arith.addf %43, %47 : vector<8x128xf32>
    %c0_32 = arith.constant 0 : index
    %c0_33 = arith.constant 0 : index
    %49 = vector.load %arg5[%c0_32, %c0_33] : memref<8x1xf32, #tpu.memory_space<vmem>>, vector<8x1xf32>
    %50 = vector.broadcast %49 : vector<8x1xf32> to vector<8x128xf32>
    %51 = arith.addf %48, %50 : vector<8x128xf32>
    %cst_34 = arith.constant 0.000000e+00 : f32
    %52 = vector.broadcast %cst_34 : f32 to vector<8x128xf32>
    %53 = arith.maximumf %51, %52 : vector<8x128xf32>
    %c0_35 = arith.constant 0 : index
    %c0_36 = arith.constant 0 : index
    %54 = vector.load %arg6[%c0_35, %c0_36] : memref<8x8xbf16, #tpu.memory_space<vmem>>, vector<8x8xbf16>
    %55 = arith.truncf %53 : vector<8x128xf32> to vector<8x128xbf16>
    %cst_37 = arith.constant dense<0.000000e+00> : vector<8x128xf32>
    %56 = tpu.matmul %54, %55, %cst_37 {dimension_numbers = #tpu.dot_dimension_numbers<[1], [0], [0], [1], [0, 0, 1, 1], [], []>} : vector<8x8xbf16>, vector<8x128xbf16>, vector<8x128xf32> -> vector<8x128xf32>
    %c0_38 = arith.constant 0 : index
    %c0_39 = arith.constant 0 : index
    %57 = vector.load %arg7[%c0_38, %c0_39] : memref<8x1xf32, #tpu.memory_space<vmem>>, vector<8x1xf32>
    %58 = vector.broadcast %57 : vector<8x1xf32> to vector<8x128xf32>
    %59 = arith.addf %56, %58 : vector<8x128xf32>
    %c0_40 = arith.constant 0 : index
    %c0_41 = arith.constant 0 : index
    %c0_42 = arith.constant 0 : index
    %60 = vector.load %arg2[%c0_40, %c0_41, %c0_42] : memref<1x8x128xbf16, #tpu.memory_space<vmem>>, vector<1x8x128xbf16>
    %61 = vector.shape_cast %60 : vector<1x8x128xbf16> to vector<8x128xbf16>
    %62 = arith.extf %61 : vector<8x128xbf16> to vector<8x128xf32>
    %63 = arith.addf %59, %62 : vector<8x128xf32>
    %cst_43 = arith.constant 0.000000e+00 : f32
    %64 = vector.broadcast %cst_43 : f32 to vector<8x128xf32>
    %65 = arith.maximumf %63, %64 : vector<8x128xf32>
    %c0_44 = arith.constant 0 : index
    %c0_45 = arith.constant 0 : index
    %c0_46 = arith.constant 0 : index
    %66 = vector.load %arg8[%c0_44, %c0_45, %c0_46] : memref<1x8x128xf32, #tpu.memory_space<vmem>>, vector<1x8x128xf32>
    %67 = vector.shape_cast %66 : vector<1x8x128xf32> to vector<8x128xf32>
    %68 = vector.shape_cast %65 : vector<8x128xf32> to vector<1x8x128xf32>
    tpu.vector_store %arg8[%c0_44, %c0_45, %c0_46], %68 {strides = array<i32>} : memref<1x8x128xf32, #tpu.memory_space<vmem>>, vector<1x8x128xf32>,
    return
  }
  func.func @transform_0(%arg0: i32, %arg1: i32) -> (i32, i32, i32) {
    %c0_i32 = arith.constant 0 : i32
    %c0_i32_0 = arith.constant 0 : i32
    return %arg0, %c0_i32, %arg1 : i32, i32, i32
  }
  func.func @transform_1(%arg0: i32, %arg1: i32) -> (i32, i32, i32) {
    %c1_i32 = arith.constant 1 : i32
    %0 = arith.addi %arg1, %c1_i32 : i32
    %c1_i32_0 = arith.constant 1 : i32
    %1 = arith.muli %0, %c1_i32_0 : i32
    %c0_i32 = arith.constant 0 : i32
    %c0_i32_1 = arith.constant 0 : i32
    return %arg0, %c0_i32, %1 : i32, i32, i32
  }
  func.func @transform_2(%arg0: i32, %arg1: i32) -> (i32, i32, i32) {
    %c0_i32 = arith.constant 0 : i32
    %c0_i32_0 = arith.constant 0 : i32
    %c0_i32_1 = arith.constant 0 : i32
    %c0_i32_2 = arith.constant 0 : i32
    return %c0_i32, %c0_i32_0, %c0_i32_1 : i32, i32, i32
  }
  func.func @transform_3(%arg0: i32, %arg1: i32) -> (i32, i32) {
    %c0_i32 = arith.constant 0 : i32
    %c0_i32_0 = arith.constant 0 : i32
    %c0_i32_1 = arith.constant 0 : i32
    return %c0_i32, %c0_i32_0 : i32, i32
  }
  func.func @transform_4(%arg0: i32, %arg1: i32) -> (i32, i32) {
    %c0_i32 = arith.constant 0 : i32
    %c0_i32_0 = arith.constant 0 : i32
    %c0_i32_1 = arith.constant 0 : i32
    return %c0_i32, %c0_i32_0 : i32, i32
  }
  func.func @transform_5(%arg0: i32, %arg1: i32) -> (i32, i32) {
    %c0_i32 = arith.constant 0 : i32
    %c0_i32_0 = arith.constant 0 : i32
    %c0_i32_1 = arith.constant 0 : i32
    return %c0_i32, %c0_i32_0 : i32, i32
  }
  func.func @transform_6(%arg0: i32, %arg1: i32) -> (i32, i32, i32) {
    %c0_i32 = arith.constant 0 : i32
    %c0_i32_0 = arith.constant 0 : i32
    return %arg0, %c0_i32, %arg1 : i32, i32, i32
  }
}

</mosaic_0001>

<bundles_post_ra>
// kernel: tpu_custom_call.1
= control target key start
LH: loop header
LB: loop body
LE: loop exit
PB: predicated region body
PF: predicated region fallthrough
CT: control target
= control target key end

     0   :  { %11 = vsyncpa [#allocation3], 0  ;;  %s1563_s0 = inlined_call_operand.vmem [shape: bf16[2,8,512], index: 0, kind: input, shape index: {}]   ;;  %s1564_s1 = inlined_call_operand.vmem [shape: bf16[2,8,512], index: 1, kind: input, shape index: {}]   ;;  %s1565_s2 = inlined_call_operand.vmem [shape: bf16[9,8,8], index: 2, kind: input, shape index: {}]   ;;  %s1566_s3 = inlined_call_operand.vmem [shape: f32[8,1], index: 3, kind: input, shape index: {}]   ;;  %s1567_s4 = inlined_call_operand.vmem [shape: bf16[8,8], index: 4, kind: input, shape index: {}]   ;;  %s1568_s5 = inlined_call_operand.vmem [shape: f32[8,1], index: 5, kind: input, shape index: {}]   ;;  %s1569_s6 = inlined_call_operand.hbm [shape: f32[2,8,384], index: 6, kind: output, shape index: {}]  }
   0x1   :  { %13 = vsyncpa [#allocation3 + $0x1], 0  ;;  %s1324_s21 = smov 0   ;;  %s1326_s22 = smov 0  }
   0x2   :  { %s1328_s23 = smov 0   ;;  %s1330_s24 = smov 0  }
   0x3   :  { %s1332_s25 = smov 0   ;;  %s1334_s26 = smov 0  }
   0x4   :  { %s1336_s27 = smov 0   ;;  %s1338_s28 = smov 0  }
   0x5 LB: > { %s984_s29 = sadd.s32 4294967295, %s1275_s28   ;;  %s985_s30 = sadd.s32 4294967294, %s1275_s28   ;;  %s1275_s28 = sphi %s1338_s28, %s19_s28   ;;  %s1271_s27 = sphi %s1336_s27, %s1578_s27   ;;  %s1267_s26 = sphi %s1334_s26, %s1577_s26   ;;  %s1263_s25 = sphi %s1332_s25, %s1576_s25   ;;  %s1259_s24 = sphi %s1330_s24, %s1575_s24   ;;  %s1255_s23 = sphi %s1328_s23, %s1574_s23   ;;  %s1251_s22 = sphi %s1326_s22, %s1573_s22   ;;  %s1247_s21 = sphi %s1324_s21, %s1572_s21  }
   0x6   : > { %s28_s7 = sadd.s32 1, %s1267_s26  ;;  %s31_s8 = sadd.s32 1, %s1271_s27 }
   0x7   : > { %p29_p0 = scmp.ge.s32.totalorder %s28_s7, 3  ;;  %p192_p1 = scmp.ne.s32.totalorder %s1255_s23, %s1251_s22 }
   0x8   : > { %p193_p2 = scmp.eq.s32.totalorder %s984_s29, 5  ;;  %p198_p5 = scmp.ne.s32.totalorder %s1251_s22, %s1247_s21 }
   0x9   : > { %s1580_s7 = smov (%p29_p0, %s28_s7), 0  ;;  %s1582_s8 = smov (!%p29_p0, %s31_s8), %s1271_s27 }
   0xa   : > { %s178_s9 = ssub.s32 %s1267_s26, %s1580_s7  ;;  %p1375_p3 = por %p193_p2, %p192_p1 }
   0xb   : > { %p33_p4 = scmp.ge.s32.totalorder %s1582_s8, 2  ;;  %p199_p6 = scmp.eq.s32.totalorder %s985_s30, 5 }
   0xc   : > { %p988_p7 = scmp.ge.s32.totalorder %s1275_s28, 1  ;;  %p253_p9 = scmp.lt.s32.totalorder %s1275_s28, 7 }
   0xd   : > { %s1584_s8 = smov (%p33_p4, %s1582_s8), 0  ;;  %p1384_p8 = por %p199_p6, %p198_p5 }
   0xe   : > { %s177_s12 = ssub.s32 %s1271_s27, %s1584_s8  ;;  %s182_s13 = sadd.s32 1, %s1255_s23 }
   0xf   : > { %s179_s14 = sor.u32 %s178_s9, %s177_s12  ;;  %p254_p10 = pnand %p988_p7, %p253_p9 }
  0x10   : > { %p180_p11 = scmp.eq.s32.totalorder %s179_s14, 0  ;;  %p295_p12 = scmp.lt.s32.totalorder (!%p254_p10), %s1263_s25, 1  ;;  %v1277_v0 = vmov (!%p254_p10), 0.0   ;;  %vm1278_vm0 = vmmov (!%p254_p10), 0   ;;  %vm331_vm1 = vcmask (!%p254_p10), 1043456   ;;  %vm327_vm2 = vcmask (!%p254_p10), 64512  }
  0x11   : > { %257 = sbr.rel (%p254_p10) target bundleno = 643 (0x283), region = 44  ;;  %p297_p13 = scmp.lt.s32.totalorder (!%p254_p10), %s1259_s24, 3  ;;  %1036 = vmatprep.subr.bf16.mxu0 (!%p254_p10), %v1277_v0  ;;  %1042 = vmatprep.subr.bf16.mxu1 (!%p254_p10), %v1277_v0  ;;  %v316_v3 = vld [vmem:[%s1565_s2] sm:$0xf] (!%p254_p10)  ;;  %v1287_v5 = vmov (!%p254_p10), 0   ;;  %vm325_vm3 = vcmask (!%p254_p10), 1039360  }
  0x12   : > { %s1393_s15 = scalar_select %p180_p11, %s1255_s23, %s182_s13  }
  0x13   : > { %s303_s19 = sadd.s32 (!%p254_p10), 1, %s1259_s24  ;;  %1038 = vmatprep.mubr.msk.bf16.mxu0 (!%p254_p10), %vm1278_vm0, %v1277_v0  ;;  %1044 = vmatprep.mubr.msk.bf16.mxu1 (!%p254_p10), %vm1278_vm0, %v1277_v0  ;;  %s1279_s13 = smov (!%p254_p10), 127   ;;  %v806_v6 = vld [vmem:[%s1566_s3] sm:$0xff] (!%p254_p10)  ;;  %vm427_vm4 = vcmask (!%p254_p10), 1031168   ;;  %vm482_vm5 = vcmask (!%p254_p10), 900096   ;;  %vm537_vm6 = vcmask (!%p254_p10), 891904  }
  0x14   : > { %p306_p0 = scmp.lt.s32.totalorder (!%p254_p10), %s303_s19, 3  ;;  %s1280_s14 = smov (!%p254_p10), 126   ;;  %1179 = vset.pattern.permute.xlu0 (!%p254_p10), %v1287_v5  ;;  %1180 = vset.pattern.permute.xlu1 (!%p254_p10), %v1287_v5  ;;  %v994_v14 = vld [vmem:[%s1565_s2 + $0x4] sm:$0xf] (!%p254_p10)  ;;  %v999_v22 = vld [vmem:[%s1565_s2 + $0xc] sm:$0xf] (!%p254_p10) }
  0x15   : > { %vm592_vm7 = vcmask (!%p254_p10), 883712   ;;  %v997_v24 = vld [vmem:[%s1565_s2 + $0x8] sm:$0xf] (!%p254_p10)  ;;  %vm647_vm8 = vcmask (!%p254_p10), 752640   ;;  %v1003_v32 = vld [vmem:[%s1565_s2 + $0x14] sm:$0xf] (!%p254_p10) }
  0x16   : > { %vm702_vm9 = vcmask (!%p254_p10), 744448   ;;  %v1001_v34 = vld [vmem:[%s1565_s2 + $0x10] sm:$0xf] (!%p254_p10)  ;;  %vm757_vm10 = vcmask (!%p254_p10), 736256   ;;  %v1007_v42 = vld [vmem:[%s1565_s2 + $0x1c] sm:$0xf] (!%p254_p10) }
  0x17   : > { %v1005_v44 = vld [vmem:[%s1565_s2 + $0x18] sm:$0xf] (!%p254_p10)  ;;  %v1009_v46 = vld [vmem:[%s1565_s2 + $0x20] sm:$0xf] (!%p254_p10) }
  0x18   : > { %s296_s16 = scalar_select %p295_p12, %s1263_s25, 1  ;;  %v816_v51 = vld [vmem:[%s1568_s5] sm:$0xff] }
  0x19   : > { %s298_s17 = scalar_select %p297_p13, %s1259_s24, 3 }
  0x1a   : > { %s990_s18 = sshll.u32 %s296_s16, 2  ;;  %s1586_s19 = smov (!%p306_p0, %s303_s19), 3 }
  0x1b   : > { %s300_s20 = sadd.s32 %s990_s18, %s298_s17  ;;  %s309_s16 = sadd.s32 %s990_s18, %s1586_s19 }
  0x1c   : > { %s991_s29 = sshll.u32 %s300_s20, 2  ;;  %s1281_s18 = smov 110  }
  0x1d   : > { %s302_s12 = scalar_lea.vmem %s1563_s0, %s991_s29  ;;  %s993_s29 = sshll.u32 %s309_s16, 2 }
  0x1e   : > { %v1409_v1 = vld [vmem:[%s302_s12] sm:$0xf]  ;;  %s311_s12 = scalar_lea.vmem %s1564_s1, %s993_s29  ;;  %s1282_s19 = smov 109  }
  0x1f   : > { %321 = vrot.lane.b32.xlu0 %v1409_v1, %s1279_s13  ;;  %423 = vrot.lane.b32.xlu1 %v1409_v1, %s1280_s14  ;;  %v379_v2 = vsel %vm331_vm1, %v1409_v1, 0  ;;  %v315_v4 = vld [vmem:[%s311_s12] sm:$0xf]  ;;  %s1283_s16 = smov 108   ;;  %s1284_s17 = smov 92  }
  0x20   : > { %1043 = vmatpush3.bf16.msra.mxu1 %v379_v2  ;;  %s292_s20 = sand.u32 1, %s1251_s22   ;;  %s1096_s29 = smul.u32 3, %s1263_s25 }
  0x21   : > { %1054 = vmatprep.subr.bf16.mxu1 %v1277_v0  ;;  %s989_s30 = sshll.u32 %s292_s20, 3 }
  0x22   : > { %s884_s9 = sadd.s32 %s1259_s24, %s1096_s29  ;;  %s873_s24 = scalar_lea.sflag [#allocation3], %s292_s20 }
  0x23   : > { %1045 = vmatmul.mubr.msk.bf16.vlgmr.msra.gmra.mrb[0].mxu1 %vm327_vm2, %v316_v3  ;;  %323 = vrot.lane.b32.xlu0 %v315_v4, %s1279_s13  ;;  %s1285_s13 = smov 91   ;;  %s1013_s12 = sshll.u32 %s884_s9, 7 }
  0x24   : > { %425 = vrot.lane.b32.xlu1 %v315_v4, %s1280_s14  ;;  %1056 = vmatprep.mubr.msk.bf16.mxu1 %vm1278_vm0, %v1277_v0  ;;  %s1286_s14 = smov 90   ;;  %s1510_s25 = scalar_lea.hbm %s1569_s6, %s1013_s12 }
  0x27   : > { %478 = vrot.lane.b32.xlu0 %v1409_v1, %s1281_s18 }
  0x28   : > { %480 = vrot.lane.b32.xlu1 %v315_v4, %s1281_s18  ;;  %s294_s18 = scalar_lea.vmem [#allocation2], %s989_s30 }
  0x2b   : > { %533 = vrot.lane.b32.xlu0 %v1409_v1, %s1282_s19 }
  0x2c   : > { %535 = vrot.lane.b32.xlu1 %v315_v4, %s1282_s19  ;;  %s888_s19 = sshll.u32 %s294_s18, 4  ;;  %s1512_s19 = int_to_ptr.vmem [resolvable:$true] %s888_s19 }
  0x2f   : > { %588 = vrot.lane.b32.xlu0 %v1409_v1, %s1283_s16 }
  0x30   : > { %590 = vrot.lane.b32.xlu1 %v315_v4, %s1283_s16 }
  0x33   : > { %643 = vrot.lane.b32.xlu0 %v1409_v1, %s1284_s17 }
  0x34   : > { %645 = vrot.lane.b32.xlu1 %v315_v4, %s1284_s17 }
  0x37   : > { %698 = vrot.lane.b32.xlu0 %v1409_v1, %s1285_s13 }
  0x38   : > { %700 = vrot.lane.b32.xlu1 %v315_v4, %s1285_s13  ;;  %s1181_s13 = scalar_lea.vmem %s1512_s19, 128 }
  0x39   : > { %p1182_p1 = scmp.ne.s32.totalorder %s1512_s19, %s1181_s13 }
  0x3b   : > { %753 = vrot.lane.b32.xlu0 %v1409_v1, %s1286_s14  ;;  %p1183_p2 = pnand %p1182_p1, %p1375_p3 }
  0x3c   : > { %755 = vrot.lane.b32.xlu1 %v315_v4, %s1286_s14  ;;  %s1288_s14 = smov [#allocation2]  }
  0x3d   : > { %p1184_p4 = pneg %p1183_p2  ;;  %s1185_s29 = sshll.u32 %s1288_s14, 4  ;;  %s1186_s29 = int_to_ptr.vmem [resolvable:$false] %s1185_s29 }
  0x3e   : > { %s1187_s30 = scalar_lea.vmem %s1186_s29, 256  ;;  %p1188_p5 = scmp.lt.s32.totalorder %s1512_s19, %s1186_s29 }
  0x3f   : > { %809 = vperm.xlu0 %1179, %v806_v6   ;;  %p1189_p6 = scmp.lt.s32.totalorder %s1187_s30, %s1181_s13 }
  0x40   : > { %819 = vperm.xlu1 %1180, %v816_v51  }
  0x41   : > { %p1190_p7 = por %p1189_p6, %p1188_p5 }
  0x43   : > { %p1191_p9 = pnand %p1190_p7, %p1184_p4 }
  0x91   : > { %v322_v7 = vpop.permute.xlu0 %321  ;;  %v424_v8 = vpop.permute.xlu1 %423 }
  0x95   : > { %v324_v9 = vpop.permute.xlu0 %323 }
  0x96   : > { %v426_v10 = vpop.permute.xlu1 %425  ;;  %v326_v11 = vsel %vm325_vm3, %v322_v7, %v324_v9 }
  0x97   : > { %v428_v12 = vsel %vm427_vm4, %v424_v8, %v426_v10  ;;  %v333_v13 = vsel %vm331_vm1, %v326_v11, 0 }
  0x98   : > { %1037 = vmatpush3.bf16.msra.mxu0 %v333_v13  ;;  %v433_v15 = vsel %vm331_vm1, %v428_v12, 0 }
  0x99   : > { %1048 = vmatprep.subr.bf16.mxu0 %v1277_v0  ;;  %v479_v17 = vpop.permute.xlu0 %478 }
  0x9a   : > { %v481_v16 = vpop.permute.xlu1 %480 }
  0x9b   : > { %v483_v18 = vsel %vm482_vm5, %v479_v17, %v481_v16  ;;  %1039 = vmatmul.mubr.msk.bf16.vlgmr.msra.gmra.mrb[0].mxu0 %vm327_vm2, %v994_v14 }
  0x9c   : > { %v488_v19 = vsel %vm331_vm1, %v483_v18, 0  ;;  %1049 = vmatpush3.bf16.msra.mxu0 %v433_v15  ;;  %1050 = vmatprep.mubr.msk.bf16.mxu0 %vm1278_vm0, %v1277_v0 }
  0x9d   : > { %1055 = vmatpush3.bf16.msra.mxu1 %v488_v19  ;;  %v534_v21 = vpop.permute.xlu0 %533  ;;  %1060 = vmatprep.subr.bf16.mxu0 %v1277_v0 }
  0x9e   : > { %v536_v20 = vpop.permute.xlu1 %535  ;;  %1066 = vmatprep.subr.bf16.mxu1 %v1277_v0 }
  0x9f   : > { %v538_v23 = vsel %vm537_vm6, %v534_v21, %v536_v20 }
  0xa0   : > { %1057 = vmatmul.mubr.msk.bf16.vlgmr.msra.gmra.mrb[4].mxu1 %vm327_vm2, %v999_v22  ;;  %v543_v25 = vsel %vm331_vm1, %v538_v23, 0 }
  0xa1   : > { %v589_v27 = vpop.permute.xlu0 %588  ;;  %1068 = vmatprep.mubr.msk.bf16.mxu1 %vm1278_vm0, %v1277_v0 }
  0xa2   : > { %v591_v26 = vpop.permute.xlu1 %590 }
  0xa3   : > { %v593_v28 = vsel %vm592_vm7, %v589_v27, %v591_v26  ;;  %1051 = vmatmul.mubr.msk.bf16.vlgmr.msra.gmra.mrb[4].mxu0 %vm327_vm2, %v997_v24 }
  0xa4   : > { %v598_v29 = vsel %vm331_vm1, %v593_v28, 0  ;;  %1061 = vmatpush3.bf16.msra.mxu0 %v543_v25  ;;  %1062 = vmatprep.mubr.msk.bf16.mxu0 %vm1278_vm0, %v1277_v0 }
  0xa5   : > { %1067 = vmatpush3.bf16.msra.mxu1 %v598_v29  ;;  %v644_v31 = vpop.permute.xlu0 %643  ;;  %1072 = vmatprep.subr.bf16.mxu0 %v1277_v0 }
  0xa6   : > { %v646_v30 = vpop.permute.xlu1 %645  ;;  %1078 = vmatprep.subr.bf16.mxu1 %v1277_v0 }
  0xa7   : > { %v648_v33 = vsel %vm647_vm8, %v644_v31, %v646_v30 }
  0xa8   : > { %1069 = vmatmul.mubr.msk.bf16.vlgmr.msra.gmra.mrb[8].mxu1 %vm327_vm2, %v1003_v32  ;;  %v653_v35 = vsel %vm331_vm1, %v648_v33, 0 }
  0xa9   : > { %v699_v37 = vpop.permute.xlu0 %698  ;;  %1080 = vmatprep.mubr.msk.bf16.mxu1 %vm1278_vm0, %v1277_v0 }
  0xaa   : > { %v701_v36 = vpop.permute.xlu1 %700 }
  0xab   : > { %v703_v38 = vsel %vm702_vm9, %v699_v37, %v701_v36  ;;  %1063 = vmatmul.mubr.msk.bf16.vlgmr.msra.gmra.mrb[8].mxu0 %vm327_vm2, %v1001_v34  ;;  %v814_v34 = vld [vmem:[%s1567_s4] sm:$0xf]  ;;  %v868_v36 = vunpack.c.l.bf16 %v1409_v1 }
  0xac   : > { %v708_v39 = vsel %vm331_vm1, %v703_v38, 0  ;;  %1073 = vmatpush3.bf16.msra.mxu0 %v653_v35  ;;  %1074 = vmatprep.mubr.msk.bf16.mxu0 %vm1278_vm0, %v1277_v0 }
  0xad   : > { %1079 = vmatpush3.bf16.msra.mxu1 %v708_v39  ;;  %v754_v41 = vpop.permute.xlu0 %753  ;;  %1084 = vmatprep.subr.bf16.mxu0 %v1277_v0 }
  0xae   : > { %v756_v40 = vpop.permute.xlu1 %755  ;;  %1090 = vmatprep.subr.bf16.mxu1 %v1277_v0 }
  0xaf   : > { %v758_v43 = vsel %vm757_vm10, %v754_v41, %v756_v40 }
  0xb0   : > { %1081 = vmatmul.mubr.msk.bf16.vlgmr.msra.gmra.mrb[12].mxu1 %vm327_vm2, %v1007_v42  ;;  %v763_v45 = vsel %vm331_vm1, %v758_v43, 0 }
  0xb1   : > { %1092 = vmatprep.mubr.msk.bf16.mxu1 %vm1278_vm0, %v1277_v0 }
  0xb3   : > { %1075 = vmatmul.mubr.msk.bf16.vlgmr.msra.gmra.mrb[12].mxu0 %vm327_vm2, %v1005_v44 }
  0xb4   : > { %1085 = vmatpush3.bf16.msra.mxu0 %v763_v45  ;;  %1086 = vmatprep.mubr.msk.bf16.mxu0 %vm1278_vm0, %v1277_v0 }
  0xbb   : > { %1087 = vmatmul.mubr.msk.bf16.vlgmr.msra.gmra.mrb[16].mxu0 %vm327_vm2, %v1009_v46 }
  0xbe   : > { %v810_v25 = vpop.permute.xlu0 %809 }
  0xbf   : > { %v820_v35 = vpop.permute.xlu1 %819 }
  0xf6   : > { %v415_v47 = vpop.f32.mrb[0].mxu1 }
  0xf7   : > { %v1046_v48 = vpop.f32.mrb[1].mxu1 }
  0xf8   : > { %v418_v49 = vpop.f32.mrb[2].mxu1 }
  0xf9   : > { %v1047_v50 = vpop.f32.mrb[3].mxu1 }
 0x16e   : > { %v369_v52 = vpop.f32.mrb[0].mxu0 }
 0x16f   : > { %v416_v53 = vadd.f32 %v415_v47, %v369_v52  ;;  %v1040_v54 = vpop.f32.mrb[1].mxu0 }
 0x170   : > { %v372_v55 = vpop.f32.mrb[2].mxu0 }
 0x171   : > { %v1041_v56 = vpop.f32.mrb[3].mxu0 }
 0x173   : > { %v524_v57 = vpop.f32.mrb[4].mxu1 }
 0x174   : > { %v1058_v58 = vpop.f32.mrb[5].mxu1 }
 0x175   : > { %v527_v59 = vpop.f32.mrb[6].mxu1 }
 0x176   : > { %v469_v60 = vpop.f32.mrb[4].mxu0  ;;  %v1059_v61 = vpop.f32.mrb[7].mxu1 }
 0x177   : > { %v475_v62 = vadd.f32 %v469_v60, %v416_v53  ;;  %v1052_v63 = vpop.f32.mrb[5].mxu0 }
 0x178   : > { %v472_v0 = vpop.f32.mrb[6].mxu0 }
 0x179   : > { %v530_v2 = vadd.f32 %v524_v57, %v475_v62  ;;  %v1053_v3 = vpop.f32.mrb[7].mxu0 }
 0x17b   : > { %v634_v4 = vpop.f32.mrb[8].mxu1 }
 0x17c   : > { %v1070_v5 = vpop.f32.mrb[9].mxu1 }
 0x17d   : > { %v637_v6 = vpop.f32.mrb[10].mxu1 }
 0x17e   : > { %v579_v7 = vpop.f32.mrb[8].mxu0  ;;  %v1071_v8 = vpop.f32.mrb[11].mxu1 }
 0x17f   : > { %v585_v9 = vadd.f32 %v579_v7, %v530_v2  ;;  %v1064_v10 = vpop.f32.mrb[9].mxu0 }
 0x180   : > { %v582_v11 = vpop.f32.mrb[10].mxu0 }
 0x181   : > { %v640_v12 = vadd.f32 %v634_v4, %v585_v9  ;;  %v1065_v13 = vpop.f32.mrb[11].mxu0 }
 0x183   : > { %v744_v14 = vpop.f32.mrb[12].mxu1 }
 0x184   : > { %v1082_v15 = vpop.f32.mrb[13].mxu1 }
 0x185   : > { %v747_v16 = vpop.f32.mrb[14].mxu1 }
 0x186   : > { %v689_v17 = vpop.f32.mrb[12].mxu0  ;;  %v1083_v18 = vpop.f32.mrb[15].mxu1 }
 0x187   : > { %v695_v19 = vadd.f32 %v689_v17, %v640_v12  ;;  %v1076_v20 = vpop.f32.mrb[13].mxu0 }
 0x188   : > { %v692_v21 = vpop.f32.mrb[14].mxu0 }
 0x189   : > { %v750_v22 = vadd.f32 %v744_v14, %v695_v19  ;;  %v1077_v23 = vpop.f32.mrb[15].mxu0 }
 0x18e   : > { %v799_v24 = vpop.f32.mrb[16].mxu0 }
 0x18f   : > { %v805_v26 = vadd.f32 %v799_v24, %v750_v22  ;;  %v1088_v27 = vpop.f32.mrb[17].mxu0 }
 0x190   : > { %v802_v28 = vpop.f32.mrb[18].mxu0 }
 0x191   : > { %v812_v29 = vadd.f32 %v810_v25, %v805_v26  ;;  %v1089_v30 = vpop.f32.mrb[19].mxu0 }
 0x193   : > { %v813_v31 = vmax.f32 %v812_v29, 0.0 }
 0x195   : > { %v815_v32 = vpack.c.bf16 %v813_v31, %v813_v31 }
 0x197   : > { %v826_v33 = vsel %vm331_vm1, %v815_v32, 0 }
 0x198   : > { %1091 = vmatpush3.bf16.msra.mxu1 %v826_v33 }
 0x19b   : > { %1093 = vmatmul.mubr.msk.bf16.vlgmr.msra.gmra.mrb[16].mxu1 %vm327_vm2, %v814_v34 }
 0x26e   : > { %v862_v37 = vpop.f32.mrb[16].mxu1 }
 0x26f   : > { %v1094_v38 = vpop.f32.mrb[17].mxu1  ;;  %v863_v39 = vadd.f32 %v862_v37, %v820_v35 }
 0x270   : > { %v865_v40 = vpop.f32.mrb[18].mxu1 }
 0x271   : > { %v869_v41 = vadd.f32 %v868_v36, %v863_v39  ;;  %v1095_v42 = vpop.f32.mrb[19].mxu1 }
 0x273   : > { %v870_v43 = vmax.f32 %v869_v41, 0.0 }
 0x275   : > { %871 = vst [vmem:[%s294_s18] sm:$0xff] %v870_v43 }
 0x276   : > { %1194 = shalt.err (!%p1191_p9)
}
 0x277   : > { %s1195_s20 = scalar_lea.hbm %s1510_s25, 128  ;;  %s1199_s18 = scalar_lea.hbm %s1569_s6, 768 }
 0x278   : > { %p1196_p10 = scmp.ne.s32.totalorder %s1510_s25, %s1195_s20  ;;  %p1200_p13 = scmp.lt.u32.totalorder %s1510_s25, %s1569_s6 }
 0x279   : > { %p1201_p0 = scmp.lt.u32.totalorder %s1199_s18, %s1195_s20  ;;  %p1203_p2 = scmp.lt.u32.totalorder %s1195_s20, %s1510_s25 }
 0x27a   : > { %p1197_p11 = pnand %p1196_p10, %p1375_p3 }
 0x27b   : > { %p1202_p1 = por %p1201_p0, %p1200_p13 }
 0x27c   : > { %p1198_p12 = pneg %p1197_p11 }
 0x27d   : > { %p1204_p4 = por %p1203_p2, %p1202_p1 }
 0x27f   : > { %p1205_p5 = pnand %p1204_p4, %p1198_p12 }
 0x281   : > { %1208 = shalt.err (!%p1205_p5)
}
 0x282   : > { %1097 = dma.vmem_to_hbm [thread:$0]  (%p1375_p3), %s1512_s19, 128, %s1510_s25, %s873_s24  }
 0x283 PF: > { %p1103_p6 = scmp.ge.s32.totalorder %s1275_s28, 2  ;;  %s900_s13 = sand.u32 1, %s1247_s21  }
 0x284   : > { %s901_s14 = scalar_lea.sflag [#allocation3], %s900_s13 }
 0x285   : > { %p1100_p7 = pnand %p1103_p6, %p1384_p8 }
 0x287   : > { %1242 = dma.done.wait (!%p1100_p7), %s901_s14, 128  }
 0x288   : > { %1244 = vsyncadd (!%p1100_p7), %s901_s14, 4294967168  ;;  %s19_s28 = sadd.s32 1, %s1275_s28   ;;  %s1572_s21 = smov %s1251_s22 }
 0x289   : > { %p16_p9 = scmp.ge.s32.totalorder %s19_s28, 8   ;;  %s1573_s22 = smov %s1255_s23 }
 0x28a   : > { %s1574_s23 = smov %s1393_s15  ;;  %s1575_s24 = smov %s1267_s26 }
 0x28b   : > { %s1576_s25 = smov %s1271_s27  ;;  %s1577_s26 = smov %s1580_s7 }
 0x28c   : > { %s1578_s27 = smov %s1584_s8  ;;  %18 = sbr.rel (!%p16_p9) target bundleno = 5 (0x5), region = 90 }
 0x293   :  { %906 = vsyncpa [#allocation3], 1 }
 0x294   :  { %908 = vsyncpa [#allocation3 + $0x1], 1 }

</bundles_post_ra>
